<compile_context>
chip_gen: v6e
topology: v6e:2x2x1
jax: 0.10.0
libtpu: 0.0.40
codegen_flags: <defaults>
</compile_context>

<pallas_src>
import jax
import jax.numpy as jnp
from jax.experimental import pallas as pl
from jax.experimental.pallas import tpu as pltpu

LANES = 128


def _round_up(x, m):
    return ((x + m - 1) // m) * m


def _num_tensorcores():
    """Best-effort TensorCores-per-chip (2 on v7x, 1 on v5e/v6e); safe fallback 1."""
    try:
        info = pltpu.get_tpu_info()
    except Exception:
        return 1
    for attr in ("num_tensorcores", "tensorcores_per_chip", "num_cores",
                 "cores_per_chip", "tensorcore_count"):
        v = getattr(info, attr, None)
        if isinstance(v, int) and v > 0:
            return v
    return 1


def _sse_pallas(x2d, t2d, *, row_tile=4096):
    """Sum of squared differences over a lane-dense (R, 128) slab."""
    R = x2d.shape[0]

    # Sublane packing requirement follows the narrowest input dtype
    # (8 rows for 32-bit, 16 for 16-bit, 32 for 8-bit).
    min_itemsize = min(jnp.dtype(x2d.dtype).itemsize, jnp.dtype(t2d.dtype).itemsize)
    sub = max(8, 32 // min_itemsize)

    # Tile sizing: HBM-bound streaming -> biggest sane tile.  tr=4096 (f32)
    # is 2 MiB / input block, 8 MiB total double-buffered for both inputs.
    tr = max(sub, min(_round_up(row_tile, sub), _round_up(R, sub)))
    nblk = pl.cdiv(R, tr)

    # The leading "parallel" chunk axis only pays off on multi-TC chips (v7x)
    # and with enough blocks to amortize the (at most one) phantom-block DMA.
    chunks = 2 if (_num_tensorcores() >= 2 and nblk >= 8) else 1
    spc = pl.cdiv(nblk, chunks)                 # grid steps per chunk
    covered_rows = chunks * spc * tr
    need_mask = covered_rows != R               # partial and/or phantom blocks
    have_phantom = chunks * spc != nblk

    def idx_in(c, s):
        blk = c * spc + s
        if have_phantom:
            # Clamp phantom trailing blocks onto a valid block; their
            # contribution is fully masked to zero in-kernel.  Waste is
            # <= (chunks*spc - nblk)/nblk of the DMA, negligible at nblk >= 8.
            blk = jnp.minimum(blk, nblk - 1)
        return (blk, 0)

    def kernel(x_ref, t_ref, out_ref, acc_ref):
        c = pl.program_id(0)
        s = pl.program_id(1)

        @pl.when(s == 0)
        def _():
            acc_ref[...] = jnp.zeros_like(acc_ref)

        def accumulate(apply_mask):
            d = x_ref[...].astype(jnp.float32) - t_ref[...].astype(jnp.float32)
            d2 = d * d
            if apply_mask:
                rows_left = R - (c * spc + s) * tr     # unclamped row start
                rid = jax.lax.broadcasted_iota(jnp.int32, (tr, LANES), 0)
                d2 = jnp.where(rid < rows_left, d2, 0.0)
            # Sublane-only reduce into the lane-parallel VMEM accumulator;
            # the single cross-lane reduce happens once per chunk (epilogue).
            acc_ref[...] += jnp.sum(d2, axis=0, keepdims=True)

        if need_mask:
            # Only boundary / phantom blocks pay for the row mask.
            is_full = ((c * spc + s) + 1) * tr <= R

            @pl.when(is_full)
            def _():
                accumulate(False)

            @pl.when(jnp.logical_not(is_full))
            def _():
                accumulate(True)
        else:
            accumulate(False)

        @pl.when(s == pl.num_programs(1) - 1)
        def _():
            out_ref[0, 0] = jnp.sum(acc_ref[...])

    bytes_in = R * LANES * (jnp.dtype(x2d.dtype).itemsize
                            + jnp.dtype(t2d.dtype).itemsize)
    cost = pl.CostEstimate(
        flops=3 * R * LANES,                 # sub + mul + add per element
        transcendentals=0,
        bytes_accessed=bytes_in + chunks * 4,
    )

    partials = pl.pallas_call(
        kernel,
        out_shape=jax.ShapeDtypeStruct((chunks, 1), jnp.float32),
        grid_spec=pltpu.PrefetchScalarGridSpec(
            num_scalar_prefetch=0,
            grid=(chunks, spc),
            in_specs=[
                pl.BlockSpec((tr, LANES), idx_in),
                pl.BlockSpec((tr, LANES), idx_in),
            ],
            out_specs=pl.BlockSpec(
                (1, 1), lambda c, s: (c, 0), memory_space=pltpu.SMEM
            ),
            scratch_shapes=[pltpu.VMEM((1, LANES), jnp.float32)],
        ),
        compiler_params=pltpu.CompilerParams(
            dimension_semantics=("parallel", "arbitrary"),
            vmem_limit_bytes=32 * 1024 * 1024,   # headroom on v5e (16 MiB default)
        ),
        cost_estimate=cost,
    )(x2d, t2d)
    return jnp.sum(partials)


def content_loss_forward(x, target, *, row_tile=4096,
                         min_pallas_elems=128 * 1024, force_pallas=False):
    """Functional ContentLoss.forward: returns (input_passthrough, mse_loss)."""
    assert x.shape == target.shape, "input / target shape mismatch"
    n = x.size
    if n == 0:
        return x, jnp.float32(0.0)

    if not force_pallas and n < min_pallas_elems:
        # Tiny feature maps: pallas_call launch + per-step overhead dominates;
        # a fused XLA reduction is strictly faster there.
        d = x.astype(jnp.float32) - target.astype(jnp.float32)
        return x, jnp.mean(d * d)

    xf = x.reshape(-1)
    tf = target.reshape(-1)

    R = n // LANES
    rem = n - R * LANES

    sse = jnp.float32(0.0)
    if R > 0:
        if rem:
            # TODO(synk): this slice materializes a near-full copy of x/target
            # for non-multiple-of-128 sizes; a 1-D-BlockSpec variant (or
            # allow_input_fusion) would avoid it.  Multiples of 128 (the
            # common conv-feature-map case) take the zero-copy reshape below.
            x_main = jax.lax.slice(xf, (0,), (R * LANES,)).reshape(R, LANES)
            t_main = jax.lax.slice(tf, (0,), (R * LANES,)).reshape(R, LANES)
        else:
            x_main = xf.reshape(R, LANES)   # free reshape, no copy
            t_main = tf.reshape(R, LANES)
        sse = sse + _sse_pallas(x_main, t_main, row_tile=row_tile)
    if rem:
        dx = (xf[R * LANES:].astype(jnp.float32)
              - tf[R * LANES:].astype(jnp.float32))
        sse = sse + jnp.sum(dx * dx)

    loss = sse / jnp.float32(n)
    # TODO(synk): optionally store `target` as bf16 (kernel upcasts to f32) to
    # cut HBM traffic ~25% on this bandwidth-bound reduction, behind a flag.
    return x, loss


if __name__ == "__main__":
    key = jax.random.PRNGKey(0)
    k_target, k_input = jax.random.split(key)

    # Small NCHW shapes consistent with a conv feature map.
    N, C, H, W = 2, 4, 16, 16
    target = jax.random.normal(k_target, (N, C, H, W), dtype=jnp.float32)
    x = jax.random.normal(k_input, (N, C, H, W), dtype=jnp.float32)

    # Force the Pallas path so the kernel is exercised even at demo size.
    out, loss = content_loss_forward(x, target, force_pallas=True)
    out = jax.block_until_ready(out)
    loss = jax.block_until_ready(loss)

    ref_loss = jnp.mean((x - target) ** 2)
    assert jnp.allclose(loss, ref_loss, rtol=1e-5, atol=1e-6), (loss, ref_loss)
    assert jnp.array_equal(out, x)

    # Default dispatch (tiny input -> fused XLA path) must agree too.
    _, loss_d = content_loss_forward(x, target)
    loss_d = jax.block_until_ready(loss_d)
    assert jnp.allclose(loss_d, ref_loss, rtol=1e-5, atol=1e-6), (loss_d, ref_loss)

    # Ragged shape: exercises the boundary-block mask + <128-element tail.
    k2a, k2b = jax.random.split(jax.random.PRNGKey(1))
    x2 = jax.random.normal(k2a, (2, 3, 10, 10), dtype=jnp.float32)
    t2 = jax.random.normal(k2b, (2, 3, 10, 10), dtype=jnp.float32)
    _, loss2 = content_loss_forward(x2, t2, force_pallas=True)
    loss2 = jax.block_until_ready(loss2)
    ref2 = jnp.mean((x2 - t2) ** 2)
    assert jnp.allclose(loss2, ref2, rtol=1e-5, atol=1e-6), (loss2, ref2)

    # Multi-block grid with a partial boundary block: exercises the pl.when
    # gating of the row mask and the multi-step accumulator.
    k3a, k3b = jax.random.split(jax.random.PRNGKey(2))
    x3 = jax.random.normal(k3a, (4, 8, 32, 32), dtype=jnp.float32)   # 32768 elems
    t3 = jax.random.normal(k3b, (4, 8, 32, 32), dtype=jnp.float32)
    _, loss3 = content_loss_forward(x3, t3, force_pallas=True, row_tile=96)
    loss3 = jax.block_until_ready(loss3)
    ref3 = jnp.mean((x3 - t3) ** 2)
    assert jnp.allclose(loss3, ref3, rtol=1e-5, atol=1e-6), (loss3, ref3)

    print("KERNEL_OK")
</pallas_src>

<mosaic_0001>
module attributes {stable_mosaic.version = 11 : i64} {
  func.func @kernel(%arg0: i32, %arg1: i32, %arg2: memref<16x128xf32, #tpu.memory_space<vmem>>, %arg3: memref<16x128xf32, #tpu.memory_space<vmem>>, %arg4: memref<1x1xf32, #tpu.memory_space<smem>>, %arg5: memref<1x128xf32, #tpu.memory_space<vmem>>) attributes {dimension_semantics = [#tpu.dimension_semantics<parallel>, #tpu.dimension_semantics<arbitrary>], iteration_bounds = array<i64: 1, 1>, scalar_prefetch = 0 : i64, scratch_operands = 1 : i64, tpu.core_type = #tpu.core_type<tc>, window_params = [{transform_indices = @transform_0, window_bounds = array<i64: 16, 128>}, {transform_indices = @transform_1, window_bounds = array<i64: 16, 128>}, {transform_indices = @transform_2, window_bounds = array<i64: 1, 1>}]} {
    %c0_i32 = arith.constant 0 : i32
    %0 = arith.cmpi eq, %arg1, %c0_i32 : i32
    %1 = arith.extui %0 : i1 to i32
    %c0_i32_0 = arith.constant 0 : i32
    %2 = arith.cmpi ne, %1, %c0_i32_0 : i32
    scf.if %2 {
      %cst_10 = arith.constant 0.000000e+00 : f32
      %15 = vector.broadcast %cst_10 : f32 to vector<1x128xf32>
      %c0_11 = arith.constant 0 : index
      %c0_12 = arith.constant 0 : index
      %16 = vector.load %arg5[%c0_11, %c0_12] : memref<1x128xf32, #tpu.memory_space<vmem>>, vector<1x128xf32>
      tpu.vector_store %arg5[%c0_11, %c0_12], %15 {strides = array<i32>} : memref<1x128xf32, #tpu.memory_space<vmem>>, vector<1x128xf32>,
    } else {
    }
    %c0 = arith.constant 0 : index
    %c0_1 = arith.constant 0 : index
    %3 = vector.load %arg2[%c0, %c0_1] : memref<16x128xf32, #tpu.memory_space<vmem>>, vector<16x128xf32>
    %c0_2 = arith.constant 0 : index
    %c0_3 = arith.constant 0 : index
    %4 = vector.load %arg3[%c0_2, %c0_3] : memref<16x128xf32, #tpu.memory_space<vmem>>, vector<16x128xf32>
    %5 = arith.subf %3, %4 : vector<16x128xf32>
    %6 = arith.mulf %5, %5 : vector<16x128xf32>
    %c0_4 = arith.constant 0 : index
    %c0_5 = arith.constant 0 : index
    %7 = vector.load %arg5[%c0_4, %c0_5] : memref<1x128xf32, #tpu.memory_space<vmem>>, vector<1x128xf32>
    %cst = arith.constant dense<0.000000e+00> : vector<128xf32>
    %8 = vector.multi_reduction <add>, %6, %cst [0] : vector<16x128xf32> to vector<128xf32>
    %9 = vector.shape_cast %8 : vector<128xf32> to vector<1x128xf32>
    %10 = arith.addf %7, %9 : vector<1x128xf32>
    %c0_6 = arith.constant 0 : index
    %c0_7 = arith.constant 0 : index
    %11 = vector.load %arg5[%c0_6, %c0_7] : memref<1x128xf32, #tpu.memory_space<vmem>>, vector<1x128xf32>
    tpu.vector_store %arg5[%c0_6, %c0_7], %10 {strides = array<i32>} : memref<1x128xf32, #tpu.memory_space<vmem>>, vector<1x128xf32>,
    %c0_i32_8 = arith.constant 0 : i32
    %12 = arith.cmpi eq, %arg1, %c0_i32_8 : i32
    %13 = arith.extui %12 : i1 to i32
    %c0_i32_9 = arith.constant 0 : i32
    %14 = arith.cmpi ne, %13, %c0_i32_9 : i32
    scf.if %14 {
      %c0_10 = arith.constant 0 : index
      %c0_11 = arith.constant 0 : index
      %15 = vector.load %arg5[%c0_10, %c0_11] : memref<1x128xf32, #tpu.memory_space<vmem>>, vector<1x128xf32>
      %16 = vector.shape_cast %15 : vector<1x128xf32> to vector<1x1x128xf32>
      %cst_12 = arith.constant dense<0.000000e+00> : vector<1xf32>
      %17 = vector.multi_reduction <add>, %16, %cst_12 [1, 2] : vector<1x1x128xf32> to vector<1xf32>
      %18 = vector.shape_cast %17 : vector<1xf32> to vector<1x1x1xf32>
      %19 = vector.extract %18[0, 0, 0] : f32 from vector<1x1x1xf32>
      %c0_13 = arith.constant 0 : index
      %c0_14 = arith.constant 0 : index
      %20 = memref.load %arg4[%c0_13, %c0_14] : memref<1x1xf32, #tpu.memory_space<smem>>
      memref.store %19, %arg4[%c0_13, %c0_14] : memref<1x1xf32, #tpu.memory_space<smem>>
    } else {
    }
    return
  }
  func.func @transform_0(%arg0: i32, %arg1: i32) -> (i32, i32) {
    %c1_i32 = arith.constant 1 : i32
    %0 = arith.muli %arg0, %c1_i32 : i32
    %1 = arith.addi %0, %arg1 : i32
    %c0_i32 = arith.constant 0 : i32
    %c0_i32_0 = arith.constant 0 : i32
    return %1, %c0_i32 : i32, i32
  }
  func.func @transform_1(%arg0: i32, %arg1: i32) -> (i32, i32) {
    %c1_i32 = arith.constant 1 : i32
    %0 = arith.muli %arg0, %c1_i32 : i32
    %1 = arith.addi %0, %arg1 : i32
    %c0_i32 = arith.constant 0 : i32
    %c0_i32_0 = arith.constant 0 : i32
    return %1, %c0_i32 : i32, i32
  }
  func.func @transform_2(%arg0: i32, %arg1: i32) -> (i32, i32) {
    %c0_i32 = arith.constant 0 : i32
    %c0_i32_0 = arith.constant 0 : i32
    return %arg0, %c0_i32 : i32, i32
  }
}

</mosaic_0001>

<bundles_post_ra>
// kernel: tpu_custom_call.1
= control target key start
LH: loop header
LB: loop body
LE: loop exit
PB: predicated region body
PF: predicated region fallthrough
CT: control target
= control target key end

     0   :  { %7 = vsyncpa [#allocation4], 0  ;;  %s199_s0 = inlined_call_operand.hbm [shape: f32[16,128], index: 0, kind: input, shape index: {}]   ;;  %s200_s1 = inlined_call_operand.hbm [shape: f32[16,128], index: 1, kind: input, shape index: {}]   ;;  %s201_s2 = inlined_call_operand.hbm [shape: f32[1,1], index: 2, kind: output, shape index: {}]  }
   0x1   :  { %8 = vsyncpa [#allocation7], 0 }
   0x2   :  { %9 = vsyncpa [#allocation5], 0  ;;  %s169_s9 = smov [#allocation3]  }
   0x3   :  { %s19_s10 = sshll.u32 %s169_s9, 4  ;;  %s20_s10 = int_to_ptr.vmem [resolvable:$true] %s19_s10 }
   0x4   :  { %s123_s11 = scalar_lea.vmem %s20_s10, 256  ;;  %p128_p1 = scmp.lt.s32.totalorder %s20_s10, %s20_s10 }
   0x5   :  { %p124_p0 = scmp.ne.s32.totalorder %s20_s10, %s123_s11  ;;  %p129_p2 = scmp.lt.s32.totalorder %s123_s11, %s123_s11 }
   0x7   :  { %p130_p3 = por %p129_p2, %p128_p1 }
   0x9   :  { %p131_p4 = pnand %p130_p3, %p124_p0 }
   0xb   :  { %134 = shalt.err (!%p131_p4)
}
   0xc   :  { %s170_s12 = smov 128   ;;  %s171_s13 = smov 8  }
   0xd   :  { %25 = dma.hbm_to_vmem [thread:$0]  %s199_s0, 256, %s20_s10, [#allocation4], %s170_s12, %s170_s12, %s171_s13  }
   0xe   :  { %s172_s16 = smov [#allocation6]  }
   0xf   :  { %s35_s17 = sshll.u32 %s172_s16, 4  ;;  %s36_s17 = int_to_ptr.vmem [resolvable:$true] %s35_s17 }
  0x10   :  { %s143_s18 = scalar_lea.vmem %s36_s17, 256  ;;  %p148_p6 = scmp.lt.s32.totalorder %s36_s17, %s36_s17 }
  0x11   :  { %p144_p5 = scmp.ne.s32.totalorder %s36_s17, %s143_s18  ;;  %p149_p7 = scmp.lt.s32.totalorder %s143_s18, %s143_s18 }
  0x13   :  { %p150_p8 = por %p149_p7, %p148_p6 }
  0x15   :  { %p151_p9 = pnand %p150_p8, %p144_p5 }
  0x17   :  { %154 = shalt.err (!%p151_p9)
}
  0x18   :  { %41 = dma.hbm_to_vmem [thread:$0]  %s200_s1, 256, %s36_s17, [#allocation7], %s170_s12, %s170_s12, %s171_s13  }
  0x19   :  { %163 = dma.done.wait [#allocation4], 256  }
  0x1a   :  { %164 = vsyncadd [#allocation4], 4294967040 }
  0x1b   :  { %165 = dma.done.wait [#allocation7], 256  }
  0x1c   :  { %166 = vsyncadd [#allocation7], 4294967040  ;;  %v173_v0 = vmov 0.0   ;;  %v57_v1 = vld [vmem:[#allocation3] sm:$0xff]  ;;  %v58_v2 = vld [vmem:[#allocation3 + $0x8] sm:$0xff]  ;;  %vm79_vm0 = vcmask 1040384  }
  0x1d   :  { %56 = vst [vmem:[#allocation2] sm:$0x1] %v173_v0  ;;  %v59_v3 = vld [vmem:[#allocation6] sm:$0xff]  ;;  %v60_v4 = vld [vmem:[#allocation6 + $0x8] sm:$0xff]  ;;  %s174_s1 = smov [#allocation8]  }
  0x1e   :  { %v61_v5 = vsub.f32 %v57_v1, %v59_v3  ;;  %v62_v6 = vsub.f32 %v58_v2, %v60_v4 }
  0x20   :  { %v63_v7 = vmul.f32 %v61_v5, %v61_v5  ;;  %v64_v8 = vmul.f32 %v62_v6, %v62_v6 }
  0x22   :  { %v66_v9 = vadd.f32 %v64_v8, %v63_v7 }
  0x24   :  { %v67_v10 = vrot.slane %v66_v9, 4  ;;  %v65_v15 = vld [vmem:[#allocation2] sm:$0x1] }
  0x26   :  { %v68_v11 = vadd.f32 %v67_v10, %v66_v9 }
  0x28   :  { %v69_v12 = vrot.slane %v68_v11, 2 }
  0x2a   :  { %v70_v13 = vadd.f32 %v69_v12, %v68_v11 }
  0x2c   :  { %v71_v14 = vrot.slane %v70_v13, 1 }
  0x2e   :  { %v72_v16 = vadd.f32 %v71_v14, %v70_v13 }
  0x30   :  { %v73_v17 = vadd.f32 %v72_v16, %v65_v15 }
  0x32   :  { %74 = vst [vmem:[#allocation2] sm:$0x1] %v73_v17 }
  0x39   :  { %v78_v18 = vld [vmem:[#allocation2] sm:$0x1] }
  0x3a   :  { %v80_v19 = vsel %vm79_vm0, %v78_v18, 0.0 }
  0x3b   :  { %81 = vadd.xlane.f32.xlu0 %v80_v19 }
  0xc4   :  { %v82_v20 = vpop.xlane.xlu0 %81 }
  0xc5   :  { %v83_v21 = vrot.slane %v82_v20, 4 }
  0xc7   :  { %v84_v22 = vadd.f32 %v83_v21, %v82_v20 }
  0xc9   :  { %v85_v23 = vrot.slane %v84_v22, 2 }
  0xcb   :  { %v86_v24 = vadd.f32 %v85_v23, %v84_v22 }
  0xcd   :  { %v87_v25 = vrot.slane %v86_v24, 1 }
  0xcf   :  { %v88_v26 = vadd.f32 %v87_v25, %v86_v24 }
  0xd1   :  { %107 = vpush %v88_v26 }
 0x102   :  { %s108_s0 = spop %107 }
 0x103   :  { %91 = sst [smem:[#allocation8]] %s108_s0 }
 0x104   :  { %99 = dma.smem_to_hbm %s174_s1, 16, %s201_s2, [#allocation5]  }
 0x105   :  { %167 = dma.done.wait [#allocation5], 16  }
 0x106   :  { %168 = vsyncadd [#allocation5], 4294967280 }
 0x107   :  { %103 = sfence }
 0x108   :  { %104 = vsyncpa [#allocation4], 1 }
 0x109   :  { %105 = vsyncpa [#allocation7], 1 }
 0x10a   :  { %106 = vsyncpa [#allocation5], 1 }

</bundles_post_ra>
